<compile_context>
chip_gen: v7x
topology: tpu7x:2x2x1
jax: 0.10.0
libtpu: 0.0.40
codegen_flags: <defaults>
</compile_context>

<pallas_src>
import jax
import jax.numpy as jnp
import numpy as np
from jax.experimental import pallas as pl
from jax.experimental.pallas import tpu as pltpu

_LANE = 128
# Pad value: far below any realistic threshold, and |pad - pad| == 0 so it
# contributes nothing to the MAE sum or the hotspot counts.
_PAD_VALUE = -3.0e38


def _partial_sums_kernel(thr_ref, pred_ref, tgt_ref, out_ref):
    """Process one (1, tile_rows, 128) block of one sample.

    thr_ref : (B,) f32 in SMEM -- per-sample hotspot threshold
    pred_ref, tgt_ref : (1, tile_rows, 128) VMEM blocks (native dtype)
    out_ref : (1, 8, 128) f32 resident per-sample accumulator:
              row 0 = sum |pred - target| (per lane)
              row 1 = sum t_hot * p_hot   (tp, per lane)
              row 2 = sum t_hot           (per lane)
              row 3 = sum p_hot           (per lane)
              rows 4..7 unused (zero)
    """
    b = pl.program_id(0)
    j = pl.program_id(1)

    @pl.when(j == 0)
    def _init():
        out_ref[...] = jnp.zeros_like(out_ref)

    thr = thr_ref[b]                               # f32 scalar from SMEM
    p = pred_ref[0].astype(jnp.float32)            # (tile_rows, 128)
    t = tgt_ref[0].astype(jnp.float32)

    absdiff = jnp.abs(p - t)
    t_hot = (t >= thr).astype(jnp.float32)
    p_hot = (p >= thr).astype(jnp.float32)

    sum_abs = jnp.sum(absdiff, axis=0, keepdims=True)        # (1, 128)
    sum_tp = jnp.sum(t_hot * p_hot, axis=0, keepdims=True)   # (1, 128)
    sum_t = jnp.sum(t_hot, axis=0, keepdims=True)            # (1, 128)
    sum_p = jnp.sum(p_hot, axis=0, keepdims=True)            # (1, 128)

    partial = jnp.concatenate(
        [sum_abs, sum_tp, sum_t, sum_p,
         jnp.zeros((4, _LANE), jnp.float32)], axis=0)         # (8, 128)
    out_ref[...] += partial[None]


def val_metric(pred, target, top_percent=0.1, eps=1e-6, max_tile_rows=2048):
    """pred: (B, 1, H, W); target: (B, 1, H, W) or (B, H, W). Returns scalar."""
    if target.ndim == 4:
        target = target[:, 0]
    B, C, H, W = pred.shape
    assert C == 1, "This implementation is for binary segmentation"
    HW = H * W

    common = jnp.promote_types(pred.dtype, target.dtype)
    p2 = pred.reshape(B, HW).astype(common)
    t2 = target.reshape(B, HW).astype(common)

    # Per-sample hotspot threshold (cheap memory-bound reduction done by XLA).
    thr = (jnp.max(t2, axis=1) *
           jnp.asarray(top_percent, dtype=common)).astype(jnp.float32)  # (B,)

    # Lane-dense layout: (B, rows, 128) with the HW axis tiled by tile_rows.
    rows = -(-HW // _LANE)
    if rows <= max_tile_rows:
        tile_rows = rows                              # whole sample, one block
    else:
        tile_rows = max(8, (max_tile_rows // 8) * 8)  # (8,128)-aligned tiles
    rows_pad = -(-rows // tile_rows) * tile_rows
    hw_pad = rows_pad * _LANE
    if hw_pad != HW:
        pad = hw_pad - HW
        p2 = jnp.pad(p2, ((0, 0), (0, pad)), constant_values=_PAD_VALUE)
        t2 = jnp.pad(t2, ((0, 0), (0, pad)), constant_values=_PAD_VALUE)
    p3 = p2.reshape(B, rows_pad, _LANE)
    t3 = t2.reshape(B, rows_pad, _LANE)
    num_j = rows_pad // tile_rows

    # Scoped-VMEM sized to the double-buffered blocks (safe on v5e/v6e/v7x).
    itemsize = jnp.dtype(common).itemsize
    blk_bytes = tile_rows * _LANE * itemsize
    need = 2 * 2 * blk_bytes + 2 * (8 * _LANE * 4) + (1 << 20)
    vmem_limit = int(min(32 * 2 ** 20, max(need, 8 * 2 ** 20)))

    partials = pl.pallas_call(
        _partial_sums_kernel,
        out_shape=jax.ShapeDtypeStruct((B, 8, _LANE), jnp.float32),
        grid=(B, num_j),
        in_specs=[
            pl.BlockSpec(memory_space=pltpu.MemorySpace.SMEM),            # thr
            pl.BlockSpec((1, tile_rows, _LANE), lambda b, j: (b, j, 0)),  # pred
            pl.BlockSpec((1, tile_rows, _LANE), lambda b, j: (b, j, 0)),  # target
        ],
        out_specs=pl.BlockSpec((1, 8, _LANE), lambda b, j: (b, 0, 0)),
        compiler_params=pltpu.CompilerParams(
            dimension_semantics=("parallel", "arbitrary"),
            vmem_limit_bytes=vmem_limit),
    )(thr, p3, t3)

    # Scalar epilogue in plain JAX (negligible cost).
    per_sample = jnp.sum(partials, axis=2)            # (B, 8) lane reduction
    sum_abs_total = jnp.sum(per_sample[:, 0])
    tp = per_sample[:, 1]
    fp = per_sample[:, 3] - tp                        # sum_p - tp
    fn = per_sample[:, 2] - tp                        # sum_t - tp

    eps = jnp.float32(eps)
    mae = sum_abs_total / jnp.float32(B * HW)
    precision = tp / (tp + fp + eps)
    recall = tp / (tp + fn + eps)
    f1 = 2.0 * precision * recall / (precision + recall + eps)
    f1_mean = jnp.mean(f1)
    return 2.0 / (1.0 / mae + 1.0 / f1_mean)


def _val_metric_ref(pred, target, top_percent=0.1, eps=1e-6):
    """Pure-JAX reference mirroring the torch forward_max path."""
    if target.ndim == 4:
        target = target[:, 0]
    B, C, H, W = pred.shape
    p = pred[:, 0].reshape(B, -1).astype(jnp.float32)
    t = target.reshape(B, -1).astype(jnp.float32)
    mae = jnp.mean(jnp.abs(p - t))
    thr = jnp.max(t, axis=1, keepdims=True) * top_percent
    t_hot = (t >= thr).astype(jnp.float32)
    p_hot = (p >= thr).astype(jnp.float32)
    tp = jnp.sum(t_hot * p_hot, axis=1)
    fp = jnp.sum((1 - t_hot) * p_hot, axis=1)
    fn = jnp.sum(t_hot * (1 - p_hot), axis=1)
    precision = tp / (tp + fp + eps)
    recall = tp / (tp + fn + eps)
    f1 = 2 * precision * recall / (precision + recall + eps)
    f1_mean = jnp.mean(f1)
    return 2.0 / (1.0 / mae + 1.0 / f1_mean)


if __name__ == "__main__":
    key = jax.random.PRNGKey(0)
    k1, k2, k3, k4, k5, k6 = jax.random.split(key, 6)

    # Test 1: base small shape (B=2, C=1, 16x16).
    pred = jax.random.uniform(k1, (2, 1, 16, 16), dtype=jnp.float32)
    target = jax.random.uniform(k2, (2, 1, 16, 16), dtype=jnp.float32)
    out = jax.block_until_ready(val_metric(pred, target, top_percent=0.1))
    ref = jax.block_until_ready(_val_metric_ref(pred, target, top_percent=0.1))
    assert np.isfinite(float(out))
    assert np.allclose(float(out), float(ref), rtol=1e-5, atol=1e-6), (out, ref)

    # Test 2: HW not a multiple of 128 (exercises lane padding).
    pred = jax.random.uniform(k3, (2, 1, 20, 20), dtype=jnp.float32)
    target = jax.random.uniform(k4, (2, 1, 20, 20), dtype=jnp.float32)
    out = jax.block_until_ready(val_metric(pred, target, top_percent=0.1))
    ref = jax.block_until_ready(_val_metric_ref(pred, target, top_percent=0.1))
    assert np.allclose(float(out), float(ref), rtol=1e-5, atol=1e-6), (out, ref)

    # Test 3: force multiple HW blocks per sample (exercises grid accumulation).
    pred = jax.random.uniform(k5, (2, 1, 64, 64), dtype=jnp.float32)
    target = jax.random.uniform(k6, (2, 1, 64, 64), dtype=jnp.float32)
    out = jax.block_until_ready(
        val_metric(pred, target, top_percent=0.1, max_tile_rows=8))
    ref = jax.block_until_ready(_val_metric_ref(pred, target, top_percent=0.1))
    assert np.allclose(float(out), float(ref), rtol=1e-5, atol=1e-6), (out, ref)

    print("KERNEL_OK")
</pallas_src>

<mosaic_0001>
module attributes {stable_mosaic.version = 11 : i64} {
  func.func @_partial_sums_kernel(%arg0: i32, %arg1: i32, %arg2: memref<2xf32, #tpu.memory_space<smem>>, %arg3: memref<1x2x128xf32, #tpu.memory_space<vmem>>, %arg4: memref<1x2x128xf32, #tpu.memory_space<vmem>>, %arg5: memref<1x8x128xf32, #tpu.memory_space<vmem>>) attributes {dimension_semantics = [#tpu.dimension_semantics<parallel>, #tpu.dimension_semantics<arbitrary>], iteration_bounds = array<i64: 2, 1>, scalar_prefetch = 0 : i64, scratch_operands = 0 : i64, tpu.core_type = #tpu.core_type<tc>, window_params = [{transform_indices = @transform_0, window_bounds = array<i64: 2>}, {transform_indices = @transform_1, window_bounds = array<i64: 1, 2, 128>}, {transform_indices = @transform_2, window_bounds = array<i64: 1, 2, 128>}, {transform_indices = @transform_3, window_bounds = array<i64: 1, 8, 128>}]} {
    %c0_i32 = arith.constant 0 : i32
    %0 = arith.cmpi eq, %arg1, %c0_i32 : i32
    %1 = arith.extui %0 : i1 to i32
    %c0_i32_0 = arith.constant 0 : i32
    %2 = arith.cmpi ne, %1, %c0_i32_0 : i32
    scf.if %2 {
      %cst_16 = arith.constant 0.000000e+00 : f32
      %34 = vector.broadcast %cst_16 : f32 to vector<1x8x128xf32>
      %c0_17 = arith.constant 0 : index
      %c0_18 = arith.constant 0 : index
      %c0_19 = arith.constant 0 : index
      %35 = vector.load %arg5[%c0_17, %c0_18, %c0_19] : memref<1x8x128xf32, #tpu.memory_space<vmem>>, vector<1x8x128xf32>
      tpu.vector_store %arg5[%c0_17, %c0_18, %c0_19], %34 {strides = array<i32>} : memref<1x8x128xf32, #tpu.memory_space<vmem>>, vector<1x8x128xf32>,
    } else {
    }
    %3 = arith.index_cast %arg0 : i32 to index
    %4 = memref.load %arg2[%3] : memref<2xf32, #tpu.memory_space<smem>>
    %c0 = arith.constant 0 : index
    %c0_1 = arith.constant 0 : index
    %c0_2 = arith.constant 0 : index
    %5 = vector.load %arg3[%c0, %c0_1, %c0_2] : memref<1x2x128xf32, #tpu.memory_space<vmem>>, vector<1x2x128xf32>
    %6 = vector.shape_cast %5 : vector<1x2x128xf32> to vector<2x128xf32>
    %c0_3 = arith.constant 0 : index
    %c0_4 = arith.constant 0 : index
    %c0_5 = arith.constant 0 : index
    %7 = vector.load %arg4[%c0_3, %c0_4, %c0_5] : memref<1x2x128xf32, #tpu.memory_space<vmem>>, vector<1x2x128xf32>
    %8 = vector.shape_cast %7 : vector<1x2x128xf32> to vector<2x128xf32>
    %9 = arith.subf %6, %8 : vector<2x128xf32>
    %10 = math.absf %9 : vector<2x128xf32>
    %11 = vector.broadcast %4 : f32 to vector<2x128xf32>
    %12 = arith.cmpf oge, %8, %11 : vector<2x128xf32>
    %13 = arith.extui %12 : vector<2x128xi1> to vector<2x128xi32>
    %14 = arith.sitofp %13 : vector<2x128xi32> to vector<2x128xf32>
    %15 = vector.broadcast %4 : f32 to vector<2x128xf32>
    %16 = arith.cmpf oge, %6, %15 : vector<2x128xf32>
    %17 = arith.extui %16 : vector<2x128xi1> to vector<2x128xi32>
    %18 = arith.sitofp %17 : vector<2x128xi32> to vector<2x128xf32>
    %cst = arith.constant dense<0.000000e+00> : vector<128xf32>
    %19 = vector.multi_reduction <add>, %10, %cst [0] : vector<2x128xf32> to vector<128xf32>
    %20 = vector.shape_cast %19 : vector<128xf32> to vector<1x128xf32>
    %21 = arith.mulf %14, %18 : vector<2x128xf32>
    %cst_6 = arith.constant dense<0.000000e+00> : vector<128xf32>
    %22 = vector.multi_reduction <add>, %21, %cst_6 [0] : vector<2x128xf32> to vector<128xf32>
    %23 = vector.shape_cast %22 : vector<128xf32> to vector<1x128xf32>
    %cst_7 = arith.constant dense<0.000000e+00> : vector<128xf32>
    %24 = vector.multi_reduction <add>, %14, %cst_7 [0] : vector<2x128xf32> to vector<128xf32>
    %25 = vector.shape_cast %24 : vector<128xf32> to vector<1x128xf32>
    %cst_8 = arith.constant dense<0.000000e+00> : vector<128xf32>
    %26 = vector.multi_reduction <add>, %18, %cst_8 [0] : vector<2x128xf32> to vector<128xf32>
    %27 = vector.shape_cast %26 : vector<128xf32> to vector<1x128xf32>
    %cst_9 = arith.constant 0.000000e+00 : f32
    %28 = vector.broadcast %cst_9 : f32 to vector<4x128xf32>
    %29 = tpu.concatenate %20, %23, %25, %27, %28 in 0 : vector<1x128xf32>, vector<1x128xf32>, vector<1x128xf32>, vector<1x128xf32>, vector<4x128xf32> -> vector<8x128xf32>
    %c0_10 = arith.constant 0 : index
    %c0_11 = arith.constant 0 : index
    %c0_12 = arith.constant 0 : index
    %30 = vector.load %arg5[%c0_10, %c0_11, %c0_12] : memref<1x8x128xf32, #tpu.memory_space<vmem>>, vector<1x8x128xf32>
    %31 = vector.shape_cast %29 : vector<8x128xf32> to vector<1x8x128xf32>
    %32 = arith.addf %30, %31 : vector<1x8x128xf32>
    %c0_13 = arith.constant 0 : index
    %c0_14 = arith.constant 0 : index
    %c0_15 = arith.constant 0 : index
    %33 = vector.load %arg5[%c0_13, %c0_14, %c0_15] : memref<1x8x128xf32, #tpu.memory_space<vmem>>, vector<1x8x128xf32>
    tpu.vector_store %arg5[%c0_13, %c0_14, %c0_15], %32 {strides = array<i32>} : memref<1x8x128xf32, #tpu.memory_space<vmem>>, vector<1x8x128xf32>,
    return
  }
  func.func @transform_0(%arg0: i32, %arg1: i32) -> i32 {
    %c0_i32 = arith.constant 0 : i32
    %c0_i32_0 = arith.constant 0 : i32
    return %c0_i32 : i32
  }
  func.func @transform_1(%arg0: i32, %arg1: i32) -> (i32, i32, i32) {
    %c0_i32 = arith.constant 0 : i32
    %c0_i32_0 = arith.constant 0 : i32
    return %arg0, %arg1, %c0_i32 : i32, i32, i32
  }
  func.func @transform_2(%arg0: i32, %arg1: i32) -> (i32, i32, i32) {
    %c0_i32 = arith.constant 0 : i32
    %c0_i32_0 = arith.constant 0 : i32
    return %arg0, %arg1, %c0_i32 : i32, i32, i32
  }
  func.func @transform_3(%arg0: i32, %arg1: i32) -> (i32, i32, i32) {
    %c0_i32 = arith.constant 0 : i32
    %c0_i32_0 = arith.constant 0 : i32
    %c0_i32_1 = arith.constant 0 : i32
    return %arg0, %c0_i32, %c0_i32_0 : i32, i32, i32
  }
}

</mosaic_0001>

<bundles_post_ra>
// kernel: tpu_custom_call.1
= control target key start
LH: loop header
LB: loop body
LE: loop exit
PB: predicated region body
PF: predicated region fallthrough
CT: control target
= control target key end

     0   :  { %8 = vsyncpa [#allocation5], 0  ;;  %s903_s0 = inlined_call_operand.hbm [shape: f32[2], index: 0, kind: input, shape index: {}]   ;;  %s904_s1 = inlined_call_operand.hbm [shape: f32[2,2,128], index: 1, kind: input, shape index: {}]   ;;  %s905_s2 = inlined_call_operand.vmem [shape: f32[2,2,128], index: 2, kind: input, shape index: {}]   ;;  %s906_s3 = inlined_call_operand.hbm [shape: f32[2,8,128], index: 3, kind: output, shape index: {}]  }
   0x1   :  { %9 = vsyncpa [#allocation3], 0 }
   0x2   :  { %11 = vsyncpa [#allocation3 + $0x1], 0 }
   0x3   :  { %12 = vsyncpa [#allocation4], 0 }
   0x4   :  { %14 = vsyncpa [#allocation4 + $0x1], 0  ;;  %s665_s12 = smov 0   ;;  %s667_s13 = smov 0  }
   0x5   :  { %s669_s14 = smov 0   ;;  %s671_s15 = smov 0  }
   0x6   :  { %s673_s16 = smov 0   ;;  %s675_s17 = smov 0  }
   0x7 LB: > { %s418_s18 = sadd.s32 4294967295, %s639_s17   ;;  %s419_s19 = sadd.s32 4294967294, %s639_s17   ;;  %s639_s17 = sphi %s675_s17, %s20_s17   ;;  %s635_s16 = sphi %s673_s16, %s930_s16   ;;  %s631_s15 = sphi %s671_s15, %s929_s15   ;;  %s627_s14 = sphi %s669_s14, %s928_s14   ;;  %s623_s13 = sphi %s667_s13, %s927_s13   ;;  %s619_s12 = sphi %s665_s12, %s926_s12  }
   0x8   : > { %p75_p0 = scmp.ne.s32.totalorder %s623_s13, %s619_s12  ;;  %p699_p1 = scmp.eq.s32.totalorder %s418_s18, 0 }
   0x9   : > { %p703_p2 = scmp.eq.s32.totalorder %s418_s18, 1  ;;  %p133_p3 = scmp.eq.s32.totalorder %s419_s19, 1 }
   0xa   : > { %s911_s20 = scalar_select %p699_p1, 1, 0 }
   0xb   : > { %p709_p4 = por %p699_p1, %p75_p0  ;;  %p420_p5 = scmp.ge.s32.totalorder %s639_s17, 1 }
   0xc   : > { %p714_p6 = por %p133_p3, %p75_p0  ;;  %p140_p7 = scmp.lt.s32.totalorder %s639_s17, 3 }
   0xd   : > { %s913_s22 = scalar_select %p709_p4, 1, 0 }
   0xe   : > { %s914_s23 = scalar_select %p714_p6, 1, 0 }
   0xf   : > { %p719_p8 = pnand %p420_p5, %p140_p7  ;;  %s32_s25 = sadd.s32 1, %s635_s16 }
  0x10   : > { %p733_p12 = scmp.ge.s32.totalorder %s32_s25, 2  ;;  %s62_s28 = sadd.s32 1, %s627_s14 }
  0x11   : > { %p444_p10 = pneg %p719_p8  ;;  %p69_p13 = scmp.ne.s32.totalorder %s627_s14, %s623_s13 }
  0x12   : > { %p70_p0 = scmp.eq.s32.totalorder %s639_s17, 0  ;;  %s510_s4 = scalar_lea.hbm %s903_s0, 16 }
  0x13   : > { %p729_p11 = pnand %p444_p10, %p699_p1  ;;  %p511_p3 = scmp.ne.s32.totalorder %s903_s0, %s510_s4 }
  0x14   : > { %p517_p9 = scmp.lt.u32.totalorder %s510_s4, %s903_s0 }
  0x15   : > { %p512_p5 = pneg %p729_p11 }
  0x17   : > { %p513_p7 = pnand %p512_p5, %p511_p3 }
  0x19   : > { %p514_p10 = pneg %p513_p7 }
  0x1b   : > { %p519_p6 = pnand %p517_p9, %p514_p10 }
  0x1d   : > { %522 = shalt.err (!%p519_p6)
}
  0x1e   : > { %s641_s9 = smov [#allocation2]   ;;  %s932_s25 = smov (%p733_p12, %s32_s25), 0 }
  0x1f   : > { %447 = dma.hbm_to_smem (!%p729_p11), %s903_s0, 16, %s641_s9, [#allocation5]  }
  0x20   : > { %p764_p6 = por %p70_p0, %p69_p13  ;;  %p773_p9 = por %p703_p2, %p69_p13 }
  0x21   : > { %s57_s26 = ssub.s32 %s635_s16, %s932_s25  ;;  %p457_p3 = scmp.lt.s32.totalorder %s639_s17, 2 }
  0x22   : > { %s919_s19 = scalar_select %p773_p9, 1, 0 }
  0x23   : > { %p60_p5 = scmp.eq.s32.totalorder %s57_s26, 0  ;;  %s162_s29 = sand.u32 1, %s627_s14  }
  0x24   : > { %s423_s27 = sshll.u32 %s162_s29, 1  ;;  %s424_s4 = sshll.u32 %s635_s16, 5 }
  0x25   : > { %s782_s30 = scalar_select %p60_p5, %s627_s14, %s62_s28  }
  0x26   : > { %s788_s7 = scalar_lea.hbm %s904_s1, %s424_s4  ;;  %s166_s21 = scalar_lea.vmem [#allocation6], %s423_s27 }
  0x27   : > { %s174_s8 = sshll.u32 %s166_s21, 4  ;;  %p794_p2 = pnand %p457_p3, %p764_p6  ;;  %s790_s8 = int_to_ptr.vmem [resolvable:$true] %s174_s8 }
  0x28   : > { %s163_s28 = scalar_lea.sflag [#allocation3], %s162_s29  ;;  %s523_s10 = scalar_lea.hbm %s788_s7, 32 }
  0x29   : > { %p524_p11 = scmp.ne.s32.totalorder %s788_s7, %s523_s10  ;;  %p525_p12 = pneg %p794_p2 }
  0x2a   : > { %s528_s27 = scalar_lea.hbm %s904_s1, 64  ;;  %p529_p7 = scmp.lt.u32.totalorder %s788_s7, %s904_s1 }
  0x2b   : > { %p526_p13 = pnand %p525_p12, %p524_p11  ;;  %p530_p10 = scmp.lt.u32.totalorder %s528_s27, %s523_s10 }
  0x2c   : > { %p532_p3 = scmp.lt.u32.totalorder %s523_s10, %s788_s7 }
  0x2d   : > { %p527_p0 = pneg %p526_p13  ;;  %p531_p6 = por %p530_p10, %p529_p7 }
  0x2f   : > { %p533_p5 = por %p532_p3, %p531_p6 }
  0x31   : > { %p534_p9 = pnand %p533_p5, %p527_p0 }
  0x33   : > { %537 = shalt.err (!%p534_p9)
}
  0x34   : > { %s538_s29 = scalar_lea.vmem %s790_s8, 32  ;;  %s642_s5 = smov [#allocation6]  }
  0x35   : > { %p539_p11 = scmp.ne.s32.totalorder %s790_s8, %s538_s29  ;;  %s543_s6 = sshll.u32 %s642_s5, 4  ;;  %s544_s6 = int_to_ptr.vmem [resolvable:$false] %s543_s6 }
  0x36   : > { %s545_s21 = scalar_lea.vmem %s544_s6, 64  ;;  %p546_p1 = scmp.lt.s32.totalorder %s790_s8, %s544_s6 }
  0x37   : > { %p541_p13 = pnand %p539_p11, %p525_p12  ;;  %p547_p7 = scmp.lt.s32.totalorder %s545_s21, %s538_s29 }
  0x39   : > { %p542_p4 = pneg %p541_p13  ;;  %p548_p10 = por %p547_p7, %p546_p1 }
  0x3b   : > { %p549_p6 = pnand %p548_p10, %p542_p4 }
  0x3d   : > { %552 = shalt.err (!%p549_p6)
}
  0x3e   : > { %451 = dma.hbm_to_vmem [thread:$0]  (!%p794_p2), %s788_s7, 32, %s790_s8, %s163_s28  }
  0x3f   : > { %193 = sbr.rel (%p719_p8) target bundleno = 119 (0x77), region = 32  ;;  %p921_p9 = scmp.ne.s32.totalorder (!%p719_p8), %s911_s20, 0 }
  0x46   : > { %606 = dma.done.wait (%p921_p9), [#allocation5], 16  }
  0x47   : > { %608 = vsyncadd (%p921_p9), [#allocation5], 4294967280  ;;  %s830_s10 = sand.u32 1, %s623_s13   ;;  %p922_p1 = scmp.ne.s32.totalorder %s913_s22, 0 }
  0x48   : > { %s427_s11 = sshll.u32 %s830_s10, 1  ;;  %s200_s9 = scalar_lea.sflag [#allocation3], %s830_s10 }
  0x49   : > { %s203_s26 = scalar_lea.vmem [#allocation6], %s427_s11 }
  0x4a   : > { %610 = dma.done.wait (%p922_p1), %s200_s9, 32  }
  0x4b   : > { %612 = vsyncadd (%p922_p1), %s200_s9, 4294967264 }
  0x4c   : > { %208 = sfence }
  0x4d   : > { %p234_p4 = scmp.lt.s32.totalorder %s631_s15, 1  ;;  %s246_s20 = sld [smem:[#allocation2 + %s631_s15]]  ;;  %v247_v0 = vld [vmem:[%s203_s26] sm:$0x3]  ;;  %vm258_vm0 = vcmask 1041408   ;;  %v643_v5 = vmov 0.0  }
  0x4e   : > { %s428_s22 = sshll.u32 %s830_s10, 3  ;;  %vm288_vm3 = vcmask 1040384   ;;  %vm291_vm4 = vcmask 1042432   ;;  %vm293_vm5 = vcmask 1043456   ;;  %s433_s18 = sshll.u32 %s631_s15, 7 }
  0x4f   : > { %s235_s24 = scalar_select %p234_p4, %s631_s15, 1 }
  0x50   : > { %s233_s4 = scalar_lea.vmem [#allocation7], %s428_s22  ;;  %s854_s21 = scalar_lea.hbm %s906_s3, %s433_s18 }
  0x51   : > { %s429_s7 = sshll.u32 %s235_s24, 1  ;;  %s312_s29 = sshll.u32 %s233_s4, 4  ;;  %s856_s29 = int_to_ptr.vmem [resolvable:$true] %s312_s29 }
  0x52   : > { %s240_s27 = scalar_lea.vmem %s905_s2, %s429_s7  ;;  %s299_s11 = scalar_lea.sflag [#allocation4], %s830_s10 }
  0x53   : > { %v248_v1 = vld [vmem:[%s240_s27] sm:$0x3]  ;;  %v251_v3 = vstv %s246_s20  ;;  %s553_s9 = scalar_lea.vmem %s856_s29, 128  ;;  %p923_p2 = scmp.ne.s32.totalorder %s919_s19, 0 }
  0x54   : > { %v249_v2 = vsub.f32 %v247_v0, %v248_v1  ;;  %vm252_vm1 = vcmp.ge.f32.partialorder %v248_v1, %v251_v3  ;;  %vm255_vm2 = vcmp.ge.f32.partialorder %v247_v0, %v251_v3  ;;  %p554_p8 = scmp.ne.s32.totalorder %s856_s29, %s553_s9  ;;  %s644_s15 = smov [#allocation7]  }
  0x55   : > { %v430_v6 = vsel %vm252_vm1, 1.0, %v643_v5  ;;  %v431_v7 = vsel %vm255_vm2, 1.0, %v643_v5  ;;  %s557_s26 = sshll.u32 %s644_s15, 4  ;;  %s558_s26 = int_to_ptr.vmem [resolvable:$false] %s557_s26 }
  0x56   : > { %v250_v4 = vand.u32 2147483647, %v249_v2  ;;  %v266_v8 = vmul.f32 %v431_v7, %v430_v6  ;;  %v274_v9 = vsel %vm258_vm0, %v430_v6, 0.0  ;;  %v281_v10 = vsel %vm258_vm0, %v431_v7, 0.0  ;;  %p555_p12 = pnand %p554_p8, %p923_p2  ;;  %s559_s20 = scalar_lea.vmem %s558_s26, 256 }
  0x57   : > { %v275_v12 = vrot.slane %v274_v9, 4  ;;  %v282_v13 = vrot.slane %v281_v10, 4  ;;  %p560_p3 = scmp.lt.s32.totalorder %s856_s29, %s558_s26  ;;  %p561_p5 = scmp.lt.s32.totalorder %s559_s20, %s553_s9 }
  0x58   : > { %v259_v11 = vsel %vm258_vm0, %v250_v4, 0.0  ;;  %v267_v15 = vsel %vm258_vm0, %v266_v8, 0.0  ;;  %p556_p0 = pneg %p555_p12 }
  0x59   : > { %v260_v14 = vrot.slane %v259_v11, 4  ;;  %v268_v16 = vrot.slane %v267_v15, 4  ;;  %v276_v17 = vadd.f32 %v275_v12, %v274_v9  ;;  %v283_v18 = vadd.f32 %v282_v13, %v281_v10  ;;  %p562_p11 = por %p561_p5, %p560_p3 }
  0x5b   : > { %v261_v19 = vadd.f32 %v260_v14, %v259_v11  ;;  %v269_v20 = vadd.f32 %v268_v16, %v267_v15  ;;  %v277_v21 = vrot.slane %v276_v17, 2  ;;  %v284_v22 = vrot.slane %v283_v18, 2  ;;  %p563_p13 = pnand %p562_p11, %p556_p0 }
  0x5d   : > { %v262_v23 = vrot.slane %v261_v19, 2  ;;  %v270_v24 = vrot.slane %v269_v20, 2  ;;  %v278_v25 = vadd.f32 %v277_v21, %v276_v17  ;;  %v285_v26 = vadd.f32 %v284_v22, %v283_v18 }
  0x5f   : > { %v263_v27 = vadd.f32 %v262_v23, %v261_v19  ;;  %v271_v28 = vadd.f32 %v270_v24, %v269_v20  ;;  %v279_v29 = vrot.slane %v278_v25, 1  ;;  %v286_v30 = vrot.slane %v285_v26, 1 }
  0x61   : > { %v264_v31 = vrot.slane %v263_v27, 1  ;;  %v272_v32 = vrot.slane %v271_v28, 1  ;;  %v280_v34 = vadd.f32 %v279_v29, %v278_v25  ;;  %v287_v36 = vadd.f32 %v286_v30, %v285_v26 }
  0x63   : > { %v265_v33 = vadd.f32 %v264_v31, %v263_v27  ;;  %v273_v35 = vadd.f32 %v272_v32, %v271_v28 }
  0x65   : > { %v289_v37 = vsel %vm288_vm3, %v265_v33, %v273_v35 }
  0x66   : > { %v290_v38 = vsel %vm258_vm0, %v289_v37, %v280_v34 }
  0x67   : > { %v292_v39 = vsel %vm291_vm4, %v290_v38, %v287_v36 }
  0x68   : > { %v294_v40 = vsel %vm293_vm5, %v292_v39, 0.0 }
  0x69   : > { %297 = vst [vmem:[%s233_s4] sm:$0xff] %v294_v40 }
  0x6a   : > { %566 = shalt.err (!%p563_p13)
}
  0x6b   : > { %s567_s10 = scalar_lea.hbm %s854_s21, 128  ;;  %s571_s8 = scalar_lea.hbm %s906_s3, 256 }
  0x6c   : > { %p568_p7 = scmp.ne.s32.totalorder %s854_s21, %s567_s10  ;;  %p572_p9 = scmp.lt.u32.totalorder %s854_s21, %s906_s3 }
  0x6d   : > { %p573_p1 = scmp.lt.u32.totalorder %s571_s8, %s567_s10  ;;  %p575_p8 = scmp.lt.u32.totalorder %s567_s10, %s854_s21 }
  0x6e   : > { %p569_p10 = pnand %p568_p7, %p923_p2 }
  0x6f   : > { %p574_p4 = por %p573_p1, %p572_p9 }
  0x70   : > { %p570_p6 = pneg %p569_p10 }
  0x71   : > { %p576_p12 = por %p575_p8, %p574_p4 }
  0x73   : > { %p577_p0 = pnand %p576_p12, %p570_p6 }
  0x75   : > { %580 = shalt.err (!%p577_p0)
}
  0x76   : > { %442 = dma.vmem_to_hbm [thread:$0]  (%p923_p2), %s856_s29, 128, %s854_s21, %s299_s11  }
  0x77 PF: > { %s324_s22 = sand.u32 1, %s619_s12   ;;  %p924_p3 = scmp.ne.s32.totalorder %s914_s23, 0 }
  0x78   : > { %p925_p5 = scmp.ge.s32.totalorder %s639_s17, 2  ;;  %s325_s18 = scalar_lea.sflag [#allocation4], %s324_s22 }
  0x7a   : > { %p453_p11 = pnand %p925_p5, %p924_p3 }
  0x7c   : > { %614 = dma.done.wait (!%p453_p11), %s325_s18, 128  }
  0x7d   : > { %616 = vsyncadd (!%p453_p11), %s325_s18, 4294967168  ;;  %s20_s17 = sadd.s32 1, %s639_s17   ;;  %s926_s12 = smov %s623_s13 }
  0x7e   : > { %p17_p13 = scmp.ge.s32.totalorder %s20_s17, 4   ;;  %s927_s13 = smov %s627_s14 }
  0x7f   : > { %s928_s14 = smov %s782_s30  ;;  %s929_s15 = smov %s635_s16 }
  0x80   : > { %s930_s16 = smov %s932_s25  ;;  %19 = sbr.rel (!%p17_p13) target bundleno = 7 (0x7), region = 89 }
  0x87   :  { %330 = vsyncpa [#allocation3], 1 }
  0x88   :  { %332 = vsyncpa [#allocation3 + $0x1], 1 }
  0x89   :  { %333 = vsyncpa [#allocation4], 1 }
  0x8a   :  { %335 = vsyncpa [#allocation4 + $0x1], 1 }
  0x8b   :  { %336 = vsyncpa [#allocation5], 1 }
  0x8c   :  { %338 = vsyncpa [#allocation5 + $0x1], 1 }

</bundles_post_ra>
